<compile_context>
chip_gen: v6e
topology: v6e:2x2x1
jax: 0.10.0
libtpu: 0.0.40
codegen_flags: <defaults>
</compile_context>

<pallas_src>
import functools
import math

import jax
import jax.numpy as jnp
from jax import lax
from jax.experimental import pallas as pl
from jax.experimental.pallas import tpu as pltpu


def _round_up(a, b):
    return (a + b - 1) // b * b


def _arc_margin_kernel(x_ref, xinv_ref, lab_ref, wt_ref, winv_ref, o_ref, *,
                       cos_m, sin_m, th, mm, s, easy_margin, tn, class_axis):
    # x_ref:    (tb, E)  mxu_dtype    xinv_ref: (tb, 1) f32
    # lab_ref:  (tb, 1)  i32          wt_ref:   (E, tn) mxu_dtype
    # winv_ref: (1, tn)  f32          o_ref:    (tb, tn) out_dtype

    # MXU matmul on the raw (un-normalized) operands, f32 accumulation.
    dots = jnp.dot(x_ref[...], wt_ref[...], preferred_element_type=jnp.float32)

    # Fold in the precomputed inverse row norms (row + column broadcasts).
    cosine = dots * xinv_ref[...] * winv_ref[...]

    # Margin math (sqrt goes to the EUP slot; clamp guards fp wiggle past 1).
    sine = jnp.sqrt(jnp.maximum(1.0 - cosine * cosine, 0.0))
    phi = cosine * cos_m - sine * sin_m
    if easy_margin:
        phi = jnp.where(cosine > 0.0, phi, cosine)
    else:
        phi = jnp.where(cosine > th, phi, cosine - mm)

    # one_hot via iota-compare against the label column (replaces scatter_).
    col0 = pl.program_id(class_axis) * tn
    col_ids = col0 + lax.broadcasted_iota(jnp.int32, cosine.shape, 1)
    is_target = col_ids == lab_ref[...]                    # (tb,1) broadcasts

    o_ref[...] = (jnp.where(is_target, phi, cosine) * s).astype(o_ref.dtype)


def arc_margin(x, weight, label, *, s=64.0, m=0.5, easy_margin=False,
               tb=None, tn=None, mxu_dtype=jnp.bfloat16,
               out_dtype=jnp.float32, weight_buffers=2,
               vmem_budget_bytes=40 * 1024 * 1024):
    """ArcMarginModel.forward(input, label) as one fused Pallas call."""
    B, E = x.shape
    N, E2 = weight.shape
    assert E == E2, "embedding size mismatch"

    x = x.astype(jnp.float32)
    weight = weight.astype(jnp.float32)

    # Inverse row norms, computed once (PyTorch F.normalize: x / max(||x||, eps)).
    eps = 1e-12
    x_inv = 1.0 / jnp.maximum(
        jnp.sqrt(jnp.sum(x * x, axis=-1, keepdims=True)), eps)            # (B,1)
    w_inv = (1.0 / jnp.maximum(
        jnp.sqrt(jnp.sum(weight * weight, axis=-1, keepdims=True)), eps)
             ).reshape(1, N)                                              # (1,N)

    mxu_bytes = jnp.dtype(mxu_dtype).itemsize
    out_bytes = jnp.dtype(out_dtype).itemsize

    def vmem_est(tb_, tn_):
        # double-buffered input tiles + output tile + small per-row vectors
        return 2 * (tb_ * E * mxu_bytes + tn_ * E * mxu_bytes
                    + tb_ * tn_ * out_bytes + (2 * tb_ + tn_) * 4)

    # ---- tile selection (lane-dense class tiles, VMEM-budgeted batch tile) ----
    user_tn = tn is not None
    if tn is None:
        tn = 512 if N >= 512 else (256 if N >= 256 else 128)
    else:
        assert tn % 128 == 0, "tn must be a multiple of 128"
    if tb is None:
        tb = _round_up(B, 8)          # full batch => weights streamed once
        while tb > 8 and vmem_est(tb, tn) > vmem_budget_bytes:
            tb = _round_up(max(tb // 2, 8), 8)
    else:
        assert tb % 8 == 0, "tb must be a multiple of 8"
    while (not user_tn) and tn > 128 and vmem_est(tb, tn) > vmem_budget_bytes:
        tn //= 2

    B_pad = _round_up(B, tb)
    N_pad = _round_up(N, tn)

    # ---- pad + cast operands (weights pre-transposed -> plain MXU contraction) ----
    x_p = jnp.zeros((B_pad, E), mxu_dtype).at[:B].set(x.astype(mxu_dtype))
    xinv_p = jnp.ones((B_pad, 1), jnp.float32).at[:B].set(x_inv)
    lab_p = jnp.full((B_pad, 1), -1, jnp.int32).at[:B, 0].set(
        label.astype(jnp.int32))
    wt_p = jnp.zeros((E, N_pad), mxu_dtype).at[:, :N].set(
        weight.T.astype(mxu_dtype))
    winv_p = jnp.ones((1, N_pad), jnp.float32).at[:, :N].set(w_inv)

    n_bt, n_ct = B_pad // tb, N_pad // tn

    # ---- grid order: make the cheaper-to-restream operand the inner one ----
    batch_outer_traffic = n_bt * N_pad * E + B_pad * E   # W restreamed per batch tile
    class_outer_traffic = n_ct * B_pad * E + N_pad * E   # x restreamed per class tile
    class_outer = class_outer_traffic < batch_outer_traffic

    if class_outer:
        grid = (n_ct, n_bt)
        class_axis = 0
        bmap = lambda c, i: (i, 0)
        cmap = lambda c, i: (0, c)
        omap = lambda c, i: (i, c)
    else:
        grid = (n_bt, n_ct)
        class_axis = 1
        bmap = lambda i, c: (i, 0)
        cmap = lambda i, c: (0, c)
        omap = lambda i, c: (i, c)

    wt_spec_kwargs = {}
    if weight_buffers != 2:   # optional deeper buffering of the streamed weights
        wt_spec_kwargs["pipeline_mode"] = pl.Buffered(weight_buffers)

    kernel = functools.partial(
        _arc_margin_kernel,
        cos_m=math.cos(m), sin_m=math.sin(m),
        th=math.cos(math.pi - m), mm=math.sin(math.pi - m) * m,
        s=float(s), easy_margin=easy_margin, tn=tn, class_axis=class_axis)

    out = pl.pallas_call(
        kernel,
        out_shape=jax.ShapeDtypeStruct((B_pad, N_pad), out_dtype),
        grid_spec=pltpu.PrefetchScalarGridSpec(
            num_scalar_prefetch=0,
            grid=grid,
            in_specs=[
                pl.BlockSpec((tb, E), bmap),                      # x (mxu_dtype)
                pl.BlockSpec((tb, 1), bmap),                      # 1/||x||
                pl.BlockSpec((tb, 1), bmap),                      # labels
                pl.BlockSpec((E, tn), cmap, **wt_spec_kwargs),    # W.T (mxu_dtype)
                pl.BlockSpec((1, tn), cmap),                      # 1/||w||
            ],
            out_specs=pl.BlockSpec((tb, tn), omap),
        ),
        compiler_params=pltpu.CompilerParams(
            dimension_semantics=("parallel", "parallel"),
            vmem_limit_bytes=48 * 1024 * 1024),   # tiles budgeted to <=40 MiB (v7x-safe)
    )(x_p, xinv_p, lab_p, wt_p, winv_p)

    return out[:B, :N]


def arc_margin_ref(x, weight, label, *, s=64.0, m=0.5, easy_margin=False,
                   mxu_dtype=jnp.float32):
    """Pure-JAX reference matching the PyTorch forward (optionally with
    bf16-quantized matmul operands to mirror the fast kernel path)."""
    cos_m, sin_m = math.cos(m), math.sin(m)
    th = math.cos(math.pi - m)
    mm = math.sin(math.pi - m) * m
    eps = 1e-12

    x_inv = 1.0 / jnp.maximum(
        jnp.sqrt(jnp.sum(x * x, axis=-1, keepdims=True)), eps)
    w_inv = 1.0 / jnp.maximum(
        jnp.sqrt(jnp.sum(weight * weight, axis=-1, keepdims=True)), eps)

    dots = (x.astype(mxu_dtype).astype(jnp.float32)
            @ weight.astype(mxu_dtype).astype(jnp.float32).T)
    cosine = dots * x_inv * w_inv.T
    sine = jnp.sqrt(jnp.maximum(1.0 - cosine * cosine, 0.0))
    phi = cosine * cos_m - sine * sin_m
    if easy_margin:
        phi = jnp.where(cosine > 0.0, phi, cosine)
    else:
        phi = jnp.where(cosine > th, phi, cosine - mm)
    one_hot = jax.nn.one_hot(label, weight.shape[0], dtype=cosine.dtype)
    return (one_hot * phi + (1.0 - one_hot) * cosine) * s


if __name__ == "__main__":
    # Small shapes consistent with the module; B=6 / N=200 also exercise the
    # batch (6->8) and class (200->256) padding paths.
    B, E, N = 6, 128, 200
    key = jax.random.PRNGKey(0)
    kx, kw, kl = jax.random.split(key, 3)

    x = jax.random.normal(kx, (B, E), dtype=jnp.float32)
    weight = jax.random.normal(kw, (N, E), dtype=jnp.float32) * (1.0 / math.sqrt(E))
    label = jax.random.randint(kl, (B,), 0, N, dtype=jnp.int32)

    for easy in (False, True):
        # Exact (f32-MXU) path vs. PyTorch-equivalent reference.
        out32 = jax.block_until_ready(
            arc_margin(x, weight, label, s=64.0, m=0.5, easy_margin=easy,
                       mxu_dtype=jnp.float32))
        ref32 = arc_margin_ref(x, weight, label, s=64.0, m=0.5, easy_margin=easy)
        assert out32.shape == (B, N)
        assert jnp.allclose(out32, ref32, atol=5e-3, rtol=1e-3), \
            f"f32 path mismatch (easy_margin={easy})"

        # Default fast path (bf16 MXU operands, f32 accumulation) vs. a
        # reference with identically quantized matmul operands.
        out16 = jax.block_until_ready(
            arc_margin(x, weight, label, s=64.0, m=0.5, easy_margin=easy))
        ref16 = arc_margin_ref(x, weight, label, s=64.0, m=0.5, easy_margin=easy,
                               mxu_dtype=jnp.bfloat16)
        assert out16.shape == (B, N)
        assert jnp.allclose(out16, ref16, atol=5e-2, rtol=1e-2), \
            f"bf16 path mismatch (easy_margin={easy})"

    print("KERNEL_OK")
</pallas_src>

<mosaic_0001>
module attributes {stable_mosaic.version = 11 : i64} {
  func.func @_arc_margin_kernel(%arg0: i32, %arg1: i32, %arg2: memref<8x128xf32, #tpu.memory_space<vmem>>, %arg3: memref<8x1xf32, #tpu.memory_space<vmem>>, %arg4: memref<8x1xi32, #tpu.memory_space<vmem>>, %arg5: memref<128x128xf32, #tpu.memory_space<vmem>>, %arg6: memref<1x128xf32, #tpu.memory_space<vmem>>, %arg7: memref<8x128xf32, #tpu.memory_space<vmem>>) attributes {dimension_semantics = [#tpu.dimension_semantics<parallel>, #tpu.dimension_semantics<parallel>], iteration_bounds = array<i64: 1, 2>, scalar_prefetch = 0 : i64, scratch_operands = 0 : i64, tpu.core_type = #tpu.core_type<tc>, window_params = [{transform_indices = @transform_0, window_bounds = array<i64: 8, 128>}, {transform_indices = @transform_1, window_bounds = array<i64: 8, 1>}, {transform_indices = @transform_2, window_bounds = array<i64: 8, 1>}, {transform_indices = @transform_3, window_bounds = array<i64: 128, 128>}, {transform_indices = @transform_4, window_bounds = array<i64: 1, 128>}, {transform_indices = @transform_5, window_bounds = array<i64: 8, 128>}]} {
    %c0 = arith.constant 0 : index
    %c0_0 = arith.constant 0 : index
    %0 = vector.load %arg2[%c0, %c0_0] : memref<8x128xf32, #tpu.memory_space<vmem>>, vector<8x128xf32>
    %c0_1 = arith.constant 0 : index
    %c0_2 = arith.constant 0 : index
    %1 = vector.load %arg5[%c0_1, %c0_2] : memref<128x128xf32, #tpu.memory_space<vmem>>, vector<128x128xf32>
    %cst = arith.constant dense<0.000000e+00> : vector<8x128xf32>
    %2 = tpu.matmul %0, %1, %cst {dimension_numbers = #tpu.dot_dimension_numbers<[1], [0], [0], [1], [0, 0, 1, 1], [], []>} : vector<8x128xf32>, vector<128x128xf32>, vector<8x128xf32> -> vector<8x128xf32>
    %c0_3 = arith.constant 0 : index
    %c0_4 = arith.constant 0 : index
    %3 = vector.load %arg3[%c0_3, %c0_4] : memref<8x1xf32, #tpu.memory_space<vmem>>, vector<8x1xf32>
    %4 = vector.broadcast %3 : vector<8x1xf32> to vector<8x128xf32>
    %5 = arith.mulf %2, %4 : vector<8x128xf32>
    %c0_5 = arith.constant 0 : index
    %c0_6 = arith.constant 0 : index
    %6 = vector.load %arg6[%c0_5, %c0_6] : memref<1x128xf32, #tpu.memory_space<vmem>>, vector<1x128xf32>
    %7 = vector.broadcast %6 : vector<1x128xf32> to vector<8x128xf32>
    %8 = arith.mulf %5, %7 : vector<8x128xf32>
    %9 = arith.mulf %8, %8 : vector<8x128xf32>
    %cst_7 = arith.constant 1.000000e+00 : f32
    %10 = vector.broadcast %cst_7 : f32 to vector<8x128xf32>
    %11 = arith.subf %10, %9 : vector<8x128xf32>
    %cst_8 = arith.constant 0.000000e+00 : f32
    %12 = vector.broadcast %cst_8 : f32 to vector<8x128xf32>
    %13 = arith.maximumf %11, %12 : vector<8x128xf32>
    %14 = math.sqrt %13 : vector<8x128xf32>
    %cst_9 = arith.constant 0.87758255 : f32
    %15 = vector.broadcast %cst_9 : f32 to vector<8x128xf32>
    %16 = arith.mulf %8, %15 : vector<8x128xf32>
    %cst_10 = arith.constant 0.47942555 : f32
    %17 = vector.broadcast %cst_10 : f32 to vector<8x128xf32>
    %18 = arith.mulf %14, %17 : vector<8x128xf32>
    %19 = arith.subf %16, %18 : vector<8x128xf32>
    %cst_11 = arith.constant -0.87758255 : f32
    %20 = vector.broadcast %cst_11 : f32 to vector<8x128xf32>
    %21 = arith.cmpf ogt, %8, %20 : vector<8x128xf32>
    %cst_12 = arith.constant 0.239712775 : f32
    %22 = vector.broadcast %cst_12 : f32 to vector<8x128xf32>
    %23 = arith.subf %8, %22 : vector<8x128xf32>
    %24 = arith.select %21, %19, %23 : vector<8x128xi1>, vector<8x128xf32>
    %c128_i32 = arith.constant 128 : i32
    %25 = arith.muli %arg1, %c128_i32 : i32
    %26 = tpu.iota {dimensions = array<i32: 1>} : vector<8x128xi32>
    %27 = vector.broadcast %25 : i32 to vector<8x128xi32>
    %28 = arith.addi %27, %26 : vector<8x128xi32>
    %c0_13 = arith.constant 0 : index
    %c0_14 = arith.constant 0 : index
    %29 = vector.load %arg4[%c0_13, %c0_14] : memref<8x1xi32, #tpu.memory_space<vmem>>, vector<8x1xi32>
    %30 = vector.broadcast %29 : vector<8x1xi32> to vector<8x128xi32>
    %31 = arith.cmpi eq, %28, %30 : vector<8x128xi32>
    %32 = arith.select %31, %24, %8 : vector<8x128xi1>, vector<8x128xf32>
    %cst_15 = arith.constant 6.400000e+01 : f32
    %33 = vector.broadcast %cst_15 : f32 to vector<8x128xf32>
    %34 = arith.mulf %32, %33 : vector<8x128xf32>
    %c0_16 = arith.constant 0 : index
    %c0_17 = arith.constant 0 : index
    %35 = vector.load %arg7[%c0_16, %c0_17] : memref<8x128xf32, #tpu.memory_space<vmem>>, vector<8x128xf32>
    tpu.vector_store %arg7[%c0_16, %c0_17], %34 {strides = array<i32>} : memref<8x128xf32, #tpu.memory_space<vmem>>, vector<8x128xf32>,
    return
  }
  func.func @transform_0(%arg0: i32, %arg1: i32) -> (i32, i32) {
    %c0_i32 = arith.constant 0 : i32
    %c0_i32_0 = arith.constant 0 : i32
    return %arg0, %c0_i32 : i32, i32
  }
  func.func @transform_1(%arg0: i32, %arg1: i32) -> (i32, i32) {
    %c0_i32 = arith.constant 0 : i32
    %c0_i32_0 = arith.constant 0 : i32
    return %arg0, %c0_i32 : i32, i32
  }
  func.func @transform_2(%arg0: i32, %arg1: i32) -> (i32, i32) {
    %c0_i32 = arith.constant 0 : i32
    %c0_i32_0 = arith.constant 0 : i32
    return %arg0, %c0_i32 : i32, i32
  }
  func.func @transform_3(%arg0: i32, %arg1: i32) -> (i32, i32) {
    %c0_i32 = arith.constant 0 : i32
    %c0_i32_0 = arith.constant 0 : i32
    return %c0_i32, %arg1 : i32, i32
  }
  func.func @transform_4(%arg0: i32, %arg1: i32) -> (i32, i32) {
    %c0_i32 = arith.constant 0 : i32
    %c0_i32_0 = arith.constant 0 : i32
    return %c0_i32, %arg1 : i32, i32
  }
  func.func @transform_5(%arg0: i32, %arg1: i32) -> (i32, i32) {
    %c0_i32 = arith.constant 0 : i32
    return %arg0, %arg1 : i32, i32
  }
}

</mosaic_0001>

<bundles_post_ra>
// kernel: tpu_custom_call.1
= control target key start
LH: loop header
LB: loop body
LE: loop exit
PB: predicated region body
PF: predicated region fallthrough
CT: control target
= control target key end

     0   :  { %10 = vsyncpa [#allocation3], 0  ;;  %s1061_s0 = inlined_call_operand.vmem [shape: f32[8,128], index: 0, kind: input, shape index: {}]   ;;  %s1062_s1 = inlined_call_operand.vmem [shape: f32[8,1], index: 1, kind: input, shape index: {}]   ;;  %s1063_s2 = inlined_call_operand.vmem [shape: s32[8,1], index: 2, kind: input, shape index: {}]   ;;  %s1064_s3 = inlined_call_operand.hbm [shape: f32[128,256], index: 3, kind: input, shape index: {}]   ;;  %s1065_s4 = inlined_call_operand.vmem [shape: f32[1,256], index: 4, kind: input, shape index: {}]   ;;  %s1066_s5 = inlined_call_operand.hbm [shape: f32[8,256], index: 5, kind: output, shape index: {}]  }
   0x1   :  { %12 = vsyncpa [#allocation3 + $0x1], 0 }
   0x2   :  { %13 = vsyncpa [#allocation4], 0 }
   0x3   :  { %15 = vsyncpa [#allocation4 + $0x1], 0  ;;  %s892_s18 = smov 0   ;;  %s894_s19 = smov 0  }
   0x4   :  { %s896_s20 = smov 0   ;;  %s898_s21 = smov 0  }
   0x5   :  { %s900_s22 = smov 0   ;;  %s902_s23 = smov 0  }
   0x6 LB: > { %s602_s24 = sadd.s32 4294967295, %s852_s23   ;;  %s603_s25 = sadd.s32 4294967294, %s852_s23   ;;  %s852_s23 = sphi %s902_s23, %s21_s23   ;;  %s848_s22 = sphi %s900_s22, %s1077_s22   ;;  %s844_s21 = sphi %s898_s21, %s1076_s21   ;;  %s840_s20 = sphi %s896_s20, %s1075_s20   ;;  %s836_s19 = sphi %s894_s19, %s1074_s19   ;;  %s832_s18 = sphi %s892_s18, %s1073_s18  }
   0x7   : > { %s30_s26 = sadd.s32 1, %s848_s22  ;;  %s118_s27 = sadd.s32 1, %s840_s20 }
   0x8   : > { %p31_p0 = scmp.ge.s32.totalorder %s30_s26, 2  ;;  %p125_p1 = scmp.ne.s32.totalorder %s840_s20, %s836_s19 }
   0x9   : > { %p126_p2 = scmp.eq.s32.totalorder %s852_s23, 0  ;;  %p131_p3 = scmp.ne.s32.totalorder %s836_s19, %s832_s18 }
   0xa   : > { %s1079_s26 = smov (%p31_p0, %s30_s26), 0  ;;  %p132_p5 = scmp.eq.s32.totalorder %s602_s24, 0 }
   0xb   : > { %p933_p4 = por %p126_p2, %p125_p1  ;;  %s115_s29 = ssub.s32 %s848_s22, %s1079_s26 }
   0xc   : > { %p183_p6 = scmp.eq.s32.totalorder %s602_s24, 1  ;;  %p116_p7 = scmp.eq.s32.totalorder %s115_s29, 0 }
   0xd   : > { %p939_p8 = por %p132_p5, %p131_p3  ;;  %p189_p10 = scmp.eq.s32.totalorder %s603_s25, 1 }
   0xe   : > { %p943_p9 = por %p183_p6, %p125_p1  ;;  %p685_p13 = scmp.lt.s32.totalorder %s852_s23, 2 }
   0xf   : > { %s948_s7 = scalar_select %p116_p7, %s840_s20, %s118_s27  }
  0x10   : > { %p950_p11 = por %p189_p10, %p131_p3  ;;  %s230_s9 = sand.u32 1, %s840_s20  }
  0x11   : > { %s609_s10 = sshll.u32 %s230_s9, 7  ;;  %s610_s11 = sshll.u32 %s848_s22, 7 }
  0x12   : > { %s239_s14 = scalar_lea.hbm %s1064_s3, %s610_s11  ;;  %s234_s15 = scalar_lea.vmem [#allocation2], %s609_s10 }
  0x13   : > { %s240_s16 = sshll.u32 %s234_s15, 4  ;;  %p963_p0 = pnand %p685_p13, %p933_p4  ;;  %s241_s16 = int_to_ptr.vmem [resolvable:$true] %s240_s16 }
  0x14   : > { %s231_s24 = scalar_lea.sflag [#allocation3], %s230_s9  ;;  %s757_s25 = scalar_lea.vmem %s241_s16, 2048 }
  0x15   : > { %p746_p1 = pneg %p963_p0  ;;  %p758_p2 = scmp.ne.s32.totalorder %s241_s16, %s757_s25 }
  0x16   : > { %s854_s27 = smov [#allocation2]  }
  0x17   : > { %p760_p3 = pnand %p758_p2, %p746_p1  ;;  %s762_s29 = sshll.u32 %s854_s27, 4  ;;  %s763_s29 = int_to_ptr.vmem [resolvable:$false] %s762_s29 }
  0x18   : > { %s764_s11 = scalar_lea.vmem %s763_s29, 4096  ;;  %p765_p6 = scmp.lt.s32.totalorder %s241_s16, %s763_s29 }
  0x19   : > { %p761_p5 = pneg %p760_p3  ;;  %p766_p7 = scmp.lt.s32.totalorder %s764_s11, %s757_s25 }
  0x1b   : > { %p767_p10 = por %p766_p7, %p765_p6 }
  0x1d   : > { %p768_p12 = pnand %p767_p10, %p761_p5 }
  0x1f   : > { %771 = shalt.err (!%p768_p12)
}
  0x20   : > { %s855_s28 = smov 256   ;;  %s856_s9 = smov 128  }
  0x21   : > { %s857_s10 = smov 8   ;;  %p611_p4 = scmp.ge.s32.totalorder %s852_s23, 1 }
  0x22   : > { %680 = dma.hbm_to_vmem [thread:$0]  (!%p963_p0), %s239_s14, 2048, %s241_s16, %s231_s24, %s855_s28, %s856_s9, %s857_s10  }
  0x23   : > { %p254_p13 = scmp.lt.s32.totalorder %s852_s23, 3 }
  0x25   : > { %p255_p1 = pnand %p611_p4, %p254_p13 }
  0x26   : > { %s974_s12 = sand.u32 (!%p255_p1), 1, %s836_s19  }
  0x27   : > { %258 = sbr.rel (%p255_p1) target bundleno = 320 (0x140), region = 40  ;;  %s612_s13 = sshll.u32 (!%p255_p1), %s974_s12, 7 }
  0x28   : > { %s261_s15 = scalar_lea.sflag (!%p255_p1), [#allocation3], %s974_s12  ;;  %s978_s25 = scalar_lea.vmem (!%p255_p1), [#allocation2], %s612_s13 }
  0x2c   : > { %823 = dma.done.wait (%p939_p8), %s261_s15, 2048  }
  0x2d   : > { %825 = vsyncadd (%p939_p8), %s261_s15, 4294965248  ;;  %v858_v0 = vmov 0.0   ;;  %vm859_vm0 = vmmov 0   ;;  %v860_v1 = vmov 0   ;;  %v337_v2 = vld [vmem:[%s978_s25 + $0x78] sm:$0xff]  ;;  %v336_v3 = vld [vmem:[%s978_s25 + $0x70] sm:$0xff]  ;;  %v440_v30 = vlaneseq }
  0x2e   : > { %638 = vmatprep.subr.mxu0 %v858_v0  ;;  %670 = vmatprep.mubr.msk.f32.mxu0 %vm859_vm0, %v858_v0  ;;  %v335_v4 = vld [vmem:[%s978_s25 + $0x68] sm:$0xff]  ;;  %v334_v5 = vld [vmem:[%s978_s25 + $0x60] sm:$0xff]  ;;  %v333_v7 = vld [vmem:[%s978_s25 + $0x58] sm:$0xff]  ;;  %p318_p8 = scmp.lt.s32.totalorder %s844_s21, 1  ;;  %s616_s10 = sshll.u32 %s844_s21, 7 }
  0x2f   : > { %741 = vset.pattern.permute.xlu0 %v860_v1  ;;  %639 = vmatpush3.msra.mxu0 %v337_v2  ;;  %v408_v6 = vld [vmem:[%s1062_s1] sm:$0xff]  ;;  %v332_v9 = vld [vmem:[%s978_s25 + $0x50] sm:$0xff]  ;;  %v331_v10 = vld [vmem:[%s978_s25 + $0x48] sm:$0xff]  ;;  %v441_v32 = vand.u32 127, %v440_v30  ;;  %v442_v34 = vstv %s616_s10  ;;  %s613_s13 = sshll.u32 %s974_s12, 3  ;;  %s1019_s14 = scalar_lea.hbm %s1066_s5, %s616_s10 }
  0x30   : > { %640 = vmatprep.subr.mxu0 %v858_v0  ;;  %411 = vperm.xlu0 %741, %v408_v6   ;;  %v444_v8 = vld [vmem:[%s1063_s2] sm:$0xff]  ;;  %v329_v12 = vld [vmem:[%s978_s25 + $0x38] sm:$0xff]  ;;  %v328_v13 = vld [vmem:[%s978_s25 + $0x30] sm:$0xff]  ;;  %s319_s29 = scalar_select %p318_p8, %s844_s21, 1 }
  0x31   : > { %641 = vmatpush3.msra.mxu0 %v336_v3  ;;  %v330_v11 = vld [vmem:[%s978_s25 + $0x40] sm:$0xff]  ;;  %v327_v14 = vld [vmem:[%s978_s25 + $0x28] sm:$0xff]  ;;  %v325_v16 = vld [vmem:[%s978_s25 + $0x18] sm:$0xff]  ;;  %v443_v38 = vadd.s32 %v442_v34, %v441_v32  ;;  %s305_s21 = scalar_lea.vmem [#allocation5], %s613_s13  ;;  %s453_s16 = scalar_lea.sflag [#allocation4], %s974_s12 }
  0x32   : > { %642 = vmatprep.subr.mxu0 %v858_v0  ;;  %v326_v15 = vld [vmem:[%s978_s25 + $0x20] sm:$0xff]  ;;  %v324_v17 = vld [vmem:[%s978_s25 + $0x10] sm:$0xff]  ;;  %v323_v18 = vld [vmem:[%s978_s25 + $0x8] sm:$0xff]  ;;  %s320_s9 = scalar_lea.vmem %s1065_s4, %s319_s29  ;;  %s468_s15 = sshll.u32 %s305_s21, 4  ;;  %s469_s15 = int_to_ptr.vmem [resolvable:$true] %s468_s15 }
  0x33   : > { %643 = vmatpush3.msra.mxu0 %v335_v4  ;;  %v322_v19 = vld [vmem:[%s978_s25] sm:$0xff]  ;;  %s772_s17 = scalar_lea.vmem %s469_s15, 128  ;;  %s861_s24 = smov [#allocation5]  }
  0x34   : > { %644 = vmatprep.subr.mxu0 %v858_v0  ;;  %446 = vperm.xlu0 %741, %v444_v8   ;;  %v321_v20 = vld [vmem:[%s1061_s0] sm:$0xff]  ;;  %p773_p12 = scmp.ne.s32.totalorder %s469_s15, %s772_s17  ;;  %s776_s27 = sshll.u32 %s861_s24, 4  ;;  %s777_s27 = int_to_ptr.vmem [resolvable:$false] %s776_s27 }
  0x35   : > { %645 = vmatpush3.msra.mxu0 %v334_v5  ;;  %v614_v23 = vld [vmem:[%s320_s9] ss:$0 sm:$0xff]  ;;  %s778_s29 = scalar_lea.vmem %s777_s27, 256  ;;  %p779_p3 = scmp.lt.s32.totalorder %s469_s15, %s777_s27 }
  0x36   : > { %646 = vmatprep.subr.mxu0 %v858_v0  ;;  %p774_p0 = pnand %p773_p12, %p943_p9  ;;  %p780_p5 = scmp.lt.s32.totalorder %s778_s29, %s772_s17 }
  0x37   : > { %647 = vmatpush3.msra.mxu0 %v333_v7 }
  0x38   : > { %648 = vmatprep.subr.mxu0 %v858_v0  ;;  %p775_p2 = pneg %p774_p0  ;;  %p781_p6 = por %p780_p5, %p779_p3 }
  0x39   : > { %649 = vmatpush3.msra.mxu0 %v332_v9 }
  0x3a   : > { %650 = vmatprep.subr.mxu0 %v858_v0  ;;  %p782_p7 = pnand %p781_p6, %p775_p2 }
  0x3b   : > { %651 = vmatpush3.msra.mxu0 %v331_v10 }
  0x3c   : > { %652 = vmatprep.subr.mxu0 %v858_v0 }
  0x3d   : > { %653 = vmatpush3.msra.mxu0 %v330_v11 }
  0x3e   : > { %654 = vmatprep.subr.mxu0 %v858_v0 }
  0x3f   : > { %655 = vmatpush3.msra.mxu0 %v329_v12 }
  0x40   : > { %656 = vmatprep.subr.mxu0 %v858_v0 }
  0x41   : > { %657 = vmatpush3.msra.mxu0 %v328_v13 }
  0x42   : > { %658 = vmatprep.subr.mxu0 %v858_v0 }
  0x43   : > { %659 = vmatpush3.msra.mxu0 %v327_v14 }
  0x44   : > { %660 = vmatprep.subr.mxu0 %v858_v0 }
  0x45   : > { %661 = vmatpush3.msra.mxu0 %v326_v15 }
  0x46   : > { %662 = vmatprep.subr.mxu0 %v858_v0 }
  0x47   : > { %663 = vmatpush3.msra.mxu0 %v325_v16 }
  0x48   : > { %664 = vmatprep.subr.mxu0 %v858_v0 }
  0x49   : > { %665 = vmatpush3.msra.mxu0 %v324_v17 }
  0x4a   : > { %666 = vmatprep.subr.mxu0 %v858_v0 }
  0x4b   : > { %667 = vmatpush3.msra.mxu0 %v323_v18 }
  0x4c   : > { %668 = vmatprep.subr.mxu0 %v858_v0 }
  0x4d   : > { %669 = vmatpush3.msra.mxu0 %v322_v19 }
  0x4e   : > { %671 = vmatmul.mubr.f32.vlgmr.msra.gmra.mxu0 %v321_v20 }
  0xab   : > { %v412_v21 = vpop.permute.xlu0 %411 }
  0xaf   : > { %v447_v41 = vpop.permute.xlu0 %446 }
  0xb0   : > { %vm448_vm4 = vcmp.eq.s32.totalorder %v443_v38, %v447_v41 }
 0x10e   : > { %v404_v22 = vpop.f32.mrf.mxu0 }
 0x10f   : > { %v414_v24 = vmul.f32 %v412_v21, %v404_v22 }
 0x110   : > { %v672_v25 = vpop.f32.mrf.mxu0 }
 0x111   : > { %v422_v26 = vmul.f32 %v614_v23, %v414_v24 }
 0x113   : > { %v423_v27 = vmul.f32 %v422_v26, %v422_v26  ;;  %v433_v39 = vmul.f32 0.87758255, %v422_v26  ;;  %v615_v43 = vadd.f32 -0.23971277, %v422_v26  ;;  %vm436_vm3 = vcmp.gt.f32.partialorder %v422_v26, -0.87758255 }
 0x115   : > { %v424_v28 = vsub.f32 1.0, %v423_v27 }
 0x117   : > { %v425_v29 = vmax.f32 %v424_v28, 0.0 }
 0x119   : > { %742 = vrsqrt.f32 %v425_v29  ;;  %vm428_vm1 = vcmp.eq.f32.partialorder %v425_v29, inf  ;;  %v431_v35 = vand.u32 2147483648, %v425_v29  ;;  %vm430_vm2 = vcmp.eq.f32.partialorder %v425_v29, 0.0 }
 0x126   : > { %v743_v31 = vpop.eup %742 }
 0x127   : > { %v427_v33 = vmul.f32 %v743_v31, %v425_v29 }
 0x129   : > { %v429_v36 = vsel %vm428_vm1, %v425_v29, %v427_v33 }
 0x12a   : > { %v432_v37 = vsel %vm430_vm2, %v431_v35, %v429_v36 }
 0x12b   : > { %v434_v40 = vmul.f32 0.47942555, %v432_v37 }
 0x12d   : > { %v435_v42 = vsub.f32 %v433_v39, %v434_v40 }
 0x12f   : > { %v438_v44 = vsel %vm436_vm3, %v435_v42, %v615_v43 }
 0x130   : > { %v449_v45 = vsel %vm448_vm4, %v438_v44, %v422_v26 }
 0x131   : > { %v450_v46 = vmul.f32 64.0, %v449_v45 }
 0x133   : > { %451 = vst [vmem:[%s305_s21] sm:$0xff] %v450_v46 }
 0x134   : > { %785 = shalt.err (!%p782_p7)
}
 0x135   : > { %s786_s11 = scalar_lea.hbm %s1019_s14, 128  ;;  %s790_s9 = scalar_lea.hbm %s1066_s5, 256 }
 0x136   : > { %p787_p10 = scmp.ne.s32.totalorder %s1019_s14, %s786_s11  ;;  %p791_p1 = scmp.lt.s32.totalorder %s1019_s14, %s1066_s5 }
 0x137   : > { %p792_p8 = scmp.lt.s32.totalorder %s790_s9, %s786_s11 }
 0x138   : > { %p788_p4 = pnand %p787_p10, %p943_p9 }
 0x139   : > { %p793_p12 = por %p792_p8, %p791_p1 }
 0x13a   : > { %p789_p13 = pneg %p788_p4 }
 0x13c   : > { %p794_p0 = pnand %p793_p12, %p789_p13 }
 0x13e   : > { %797 = shalt.err (!%p794_p0)
}
 0x13f   : > { %675 = dma.vmem_to_hbm [thread:$0]  (%p943_p9), %s469_s15, 128, %s1019_s14, %s453_s16  }
 0x140 PF: > { %s480_s21 = sand.u32 1, %s832_s18   ;;  %p1072_p2 = scmp.ge.s32.totalorder %s852_s23, 2 }
 0x141   : > { %s481_s25 = scalar_lea.sflag [#allocation4], %s480_s21 }
 0x142   : > { %p682_p3 = pnand %p1072_p2, %p950_p11 }
 0x144   : > { %p683_p5 = pneg %p682_p3 }
 0x146   : > { %827 = dma.done.wait (%p683_p5), %s481_s25, 128  }
 0x147   : > { %829 = vsyncadd (%p683_p5), %s481_s25, 4294967168  ;;  %s21_s23 = sadd.s32 1, %s852_s23   ;;  %s1073_s18 = smov %s836_s19 }
 0x148   : > { %p18_p6 = scmp.ge.s32.totalorder %s21_s23, 4   ;;  %s1074_s19 = smov %s840_s20 }
 0x149   : > { %s1075_s20 = smov %s948_s7  ;;  %s1076_s21 = smov %s848_s22 }
 0x14a   : > { %s1077_s22 = smov %s1079_s26  ;;  %20 = sbr.rel (!%p18_p6) target bundleno = 6 (0x6), region = 97 }
 0x14f   :  { %486 = vsyncpa [#allocation3], 1 }
 0x150   :  { %488 = vsyncpa [#allocation3 + $0x1], 1 }
 0x151   :  { %489 = vsyncpa [#allocation4], 1 }
 0x152   :  { %491 = vsyncpa [#allocation4 + $0x1], 1 }

</bundles_post_ra>
